<compile_context>
chip_gen: v7x
topology: tpu7x:2x2x1
jax: 0.10.0
libtpu: 0.0.40
codegen_flags: <defaults>
</compile_context>

<pallas_src>
import jax
import jax.numpy as jnp
from jax import lax
from jax.experimental import pallas as pl
from jax.experimental.pallas import tpu as pltpu


def _packer_linear_kernel(x_ref, w_ref, b_ref, o_ref, acc_ref):
    # x_ref: (tm, tk)   activations tile (feed dtype, e.g. bf16)
    # w_ref: (tk, tn)   weight tile, already (in, out) layout -> direct MXU feed
    # b_ref: (1, tn)    f32 bias tile
    # o_ref: (tm, tn)   output tile
    # acc_ref: (tm, tn) f32 accumulator, resident across the K grid axis
    k = pl.program_id(2)

    @pl.when(k == 0)
    def _():
        acc_ref[...] = jnp.zeros_like(acc_ref)

    acc_ref[...] += jnp.dot(x_ref[...], w_ref[...],
                            preferred_element_type=jnp.float32)

    @pl.when(k == pl.num_programs(2) - 1)
    def _():
        o_ref[...] = (acc_ref[...] + b_ref[...]).astype(o_ref.dtype)


def _round_up(x, m):
    return ((x + m - 1) // m) * m


def _pick_tile(dim, preferred, quantum):
    """Quantum-aligned tile <= preferred.  The wrapper pads the dimension up
    to a multiple of the returned tile, so any returned value is legal (never
    falls back to one oversized whole-dimension block)."""
    t = min(preferred, _round_up(dim, quantum))
    return max(quantum, (t // quantum) * quantum)


def _pad_2d(a, rows, cols):
    pr, pc = rows - a.shape[0], cols - a.shape[1]
    if pr or pc:
        a = jnp.pad(a, ((0, pr), (0, pc)))
    return a


def packer_forward(x, weight, bias, pre_shape=None, post_shape=None, *,
                   tm=512, tn=512, tk=1024, feed_dtype=jnp.bfloat16,
                   xla_fallback_flops=1 << 22):
    """Packer.forward: reshape(pre) -> Linear(weight, bias) -> reshape(post).

    weight: (out_features, in_features)  -- PyTorch nn.Linear convention
    bias:   (out_features,)
    feed_dtype: MXU operand dtype (bf16 default; pass jnp.float32 for exact
      parity with PyTorch's f32 nn.Linear).
    """
    # --- pre reshape (glue, metadata only) ---
    x2 = x.reshape(pre_shape) if pre_shape is not None else x
    M, K = x2.shape
    N, K_w = weight.shape
    assert K == K_w, "weight in_features must match activation feature dim"
    out_dtype = x2.dtype

    # Weight to (K, N): one transpose OUTSIDE the kernel (fused with the cast
    # by XLA, amortized over all weight re-reads).
    w_kn = weight.T

    # Tiny problems: the pallas_call launch + per-grid-step overhead dominates;
    # let XLA's fused matmul handle them.
    if 2 * M * N * K < xla_fallback_flops:
        out = (jnp.dot(x2, w_kn) + bias).astype(out_dtype)
        return out.reshape(post_shape) if post_shape is not None else out

    # Cast operands in the wrapper (not in-kernel): halves HBM/VMEM bytes of
    # the input tiles; accumulation and bias add stay f32.
    x_feed = x2.astype(feed_dtype)
    w_feed = w_kn.astype(feed_dtype)
    b2 = bias.astype(jnp.float32).reshape(1, N)

    # Sublane quantum depends on the packed operand dtype (8 for f32, 16 for
    # bf16, 32 for fp8); lane quantum is 128.
    sub_q = 8 * 4 // jnp.dtype(feed_dtype).itemsize
    tm = _pick_tile(M, tm, sub_q)
    tn = _pick_tile(N, tn, 128)
    tk = _pick_tile(K, tk, 128)

    # Dual-TC chips (v7x): make sure the parallel (i, j) grid has >= 2 blocks,
    # shrinking tm (never tn -> output stays lane-dense) if needed.
    while (pl.cdiv(M, tm) * pl.cdiv(N, tn)) < 2 and tm > sub_q:
        tm = max(sub_q, ((tm // 2) // sub_q) * sub_q)

    # Pad to tile multiples (zero K-padding is exact; M/N padding is sliced
    # off below).  Replaces the old "one giant block" fallback.
    Mp, Np, Kp = _round_up(M, tm), _round_up(N, tn), _round_up(K, tk)
    x_feed = _pad_2d(x_feed, Mp, Kp)
    w_feed = _pad_2d(w_feed, Kp, Np)
    b2 = _pad_2d(b2, 1, Np)
    grid = (Mp // tm, Np // tn, Kp // tk)

    # VMEM budget: conservative fraction of the chip's physical capacity.
    try:
        vmem_cap = pltpu.get_tpu_info().vmem_capacity_bytes
    except Exception:  # pragma: no cover - older jax / query unavailable
        vmem_cap = 128 * 1024 * 1024
    vmem_limit = int(min(100 * 1024 * 1024, (vmem_cap * 3) // 4))

    isz = jnp.dtype(feed_dtype).itemsize
    cost = pl.CostEstimate(
        flops=2 * Mp * Np * Kp,
        bytes_accessed=(Mp * Kp * isz + Kp * Np * isz + Np * 4
                        + Mp * Np * jnp.dtype(out_dtype).itemsize),
        transcendentals=0)

    out = pl.pallas_call(
        _packer_linear_kernel,
        out_shape=jax.ShapeDtypeStruct((Mp, Np), out_dtype),
        grid_spec=pltpu.PrefetchScalarGridSpec(
            num_scalar_prefetch=0,
            grid=grid,
            in_specs=[
                pl.BlockSpec((tm, tk), lambda i, j, k: (i, k)),   # x    (M, K)
                pl.BlockSpec((tk, tn), lambda i, j, k: (k, j)),   # w    (K, N)
                pl.BlockSpec((1, tn), lambda i, j, k: (0, j)),    # bias (1, N)
            ],
            out_specs=pl.BlockSpec((tm, tn), lambda i, j, k: (i, j)),
            scratch_shapes=[pltpu.VMEM((tm, tn), jnp.float32)],
        ),
        compiler_params=pltpu.CompilerParams(
            dimension_semantics=("parallel", "parallel", "arbitrary"),
            vmem_limit_bytes=vmem_limit,
        ),
        cost_estimate=cost,
    )(x_feed, w_feed, b2)

    if Mp != M or Np != N:
        out = out[:M, :N]

    # --- post reshape (glue, metadata only) ---
    return out.reshape(post_shape) if post_shape is not None else out


if __name__ == "__main__":
    # Small but non-degenerate shapes: with tm=64, tn=128, tk=128 the grid is
    # (2, 2, 2), exercising accumulator init / K-reduction / bias-in-finalize
    # and the >=2-parallel-blocks (dual-TC) path.
    B, S, H = 2, 64, 256

    key = jax.random.PRNGKey(0)
    kx, kw, kb = jax.random.split(key, 3)

    x = jax.random.normal(kx, (B, S, H), dtype=jnp.float32)
    # Deterministic nn.Linear(H, H) parameters (synthetic init, not a checkpoint).
    weight = jax.random.normal(kw, (H, H), dtype=jnp.float32) / jnp.sqrt(H)
    bias = jax.random.normal(kb, (H,), dtype=jnp.float32) * 0.01

    pre_shape = (B * S, H)
    post_shape = (B, S, H)

    # xla_fallback_flops=0 forces the Pallas path so the kernel itself is tested.
    y = packer_forward(x, weight, bias, pre_shape, post_shape,
                       tm=64, tn=128, tk=128, xla_fallback_flops=0)
    y = jax.block_until_ready(y)

    # Pure-JAX reference of Packer(nn.Linear(H, H), pre_shape, post_shape),
    # computed at full f32 precision.
    ref = (jnp.dot(x.reshape(pre_shape), weight.T,
                   precision=lax.Precision.HIGHEST) + bias).reshape(post_shape)

    assert y.shape == post_shape and y.dtype == jnp.float32
    # bf16 MXU feed with f32 accumulation -> tolerance loosened accordingly.
    assert jnp.allclose(y, ref, atol=5e-2, rtol=5e-2), (
        f"max abs err = {jnp.max(jnp.abs(y - ref))}")

    print("KERNEL_OK")
</pallas_src>

<mosaic_0001>
module attributes {stable_mosaic.version = 11 : i64} {
  func.func @_packer_linear_kernel(%arg0: i32, %arg1: i32, %arg2: i32, %arg3: memref<64x128xbf16, #tpu.memory_space<vmem>>, %arg4: memref<128x128xbf16, #tpu.memory_space<vmem>>, %arg5: memref<1x128xf32, #tpu.memory_space<vmem>>, %arg6: memref<64x128xf32, #tpu.memory_space<vmem>>, %arg7: memref<64x128xf32, #tpu.memory_space<vmem>>) attributes {dimension_semantics = [#tpu.dimension_semantics<parallel>, #tpu.dimension_semantics<parallel>, #tpu.dimension_semantics<arbitrary>], iteration_bounds = array<i64: 2, 2, 2>, scalar_prefetch = 0 : i64, scratch_operands = 1 : i64, tpu.core_type = #tpu.core_type<tc>, window_params = [{transform_indices = @transform_0, window_bounds = array<i64: 64, 128>}, {transform_indices = @transform_1, window_bounds = array<i64: 128, 128>}, {transform_indices = @transform_2, window_bounds = array<i64: 1, 128>}, {transform_indices = @transform_3, window_bounds = array<i64: 64, 128>}]} {
    %c0_i32 = arith.constant 0 : i32
    %0 = arith.cmpi eq, %arg2, %c0_i32 : i32
    %1 = arith.extui %0 : i1 to i32
    %c0_i32_0 = arith.constant 0 : i32
    %2 = arith.cmpi ne, %1, %c0_i32_0 : i32
    scf.if %2 {
      %cst_9 = arith.constant 0.000000e+00 : f32
      %12 = vector.broadcast %cst_9 : f32 to vector<64x128xf32>
      %c0_10 = arith.constant 0 : index
      %c0_11 = arith.constant 0 : index
      %13 = vector.load %arg7[%c0_10, %c0_11] : memref<64x128xf32, #tpu.memory_space<vmem>>, vector<64x128xf32>
      tpu.vector_store %arg7[%c0_10, %c0_11], %12 {strides = array<i32>} : memref<64x128xf32, #tpu.memory_space<vmem>>, vector<64x128xf32>,
    } else {
    }
    %c0 = arith.constant 0 : index
    %c0_1 = arith.constant 0 : index
    %3 = vector.load %arg7[%c0, %c0_1] : memref<64x128xf32, #tpu.memory_space<vmem>>, vector<64x128xf32>
    %c0_2 = arith.constant 0 : index
    %c0_3 = arith.constant 0 : index
    %4 = vector.load %arg3[%c0_2, %c0_3] : memref<64x128xbf16, #tpu.memory_space<vmem>>, vector<64x128xbf16>
    %c0_4 = arith.constant 0 : index
    %c0_5 = arith.constant 0 : index
    %5 = vector.load %arg4[%c0_4, %c0_5] : memref<128x128xbf16, #tpu.memory_space<vmem>>, vector<128x128xbf16>
    %cst = arith.constant dense<0.000000e+00> : vector<64x128xf32>
    %6 = tpu.matmul %4, %5, %cst {dimension_numbers = #tpu.dot_dimension_numbers<[1], [0], [0], [1], [0, 0, 1, 1], [], []>} : vector<64x128xbf16>, vector<128x128xbf16>, vector<64x128xf32> -> vector<64x128xf32>
    %7 = arith.addf %3, %6 : vector<64x128xf32>
    %c0_6 = arith.constant 0 : index
    %c0_7 = arith.constant 0 : index
    %8 = vector.load %arg7[%c0_6, %c0_7] : memref<64x128xf32, #tpu.memory_space<vmem>>, vector<64x128xf32>
    tpu.vector_store %arg7[%c0_6, %c0_7], %7 {strides = array<i32>} : memref<64x128xf32, #tpu.memory_space<vmem>>, vector<64x128xf32>,
    %c1_i32 = arith.constant 1 : i32
    %9 = arith.cmpi eq, %arg2, %c1_i32 : i32
    %10 = arith.extui %9 : i1 to i32
    %c0_i32_8 = arith.constant 0 : i32
    %11 = arith.cmpi ne, %10, %c0_i32_8 : i32
    scf.if %11 {
      %c0_9 = arith.constant 0 : index
      %c0_10 = arith.constant 0 : index
      %12 = vector.load %arg7[%c0_9, %c0_10] : memref<64x128xf32, #tpu.memory_space<vmem>>, vector<64x128xf32>
      %c0_11 = arith.constant 0 : index
      %c0_12 = arith.constant 0 : index
      %13 = vector.load %arg5[%c0_11, %c0_12] : memref<1x128xf32, #tpu.memory_space<vmem>>, vector<1x128xf32>
      %14 = vector.broadcast %13 : vector<1x128xf32> to vector<64x128xf32>
      %15 = arith.addf %12, %14 : vector<64x128xf32>
      %c0_13 = arith.constant 0 : index
      %c0_14 = arith.constant 0 : index
      %16 = vector.load %arg6[%c0_13, %c0_14] : memref<64x128xf32, #tpu.memory_space<vmem>>, vector<64x128xf32>
      tpu.vector_store %arg6[%c0_13, %c0_14], %15 {strides = array<i32>} : memref<64x128xf32, #tpu.memory_space<vmem>>, vector<64x128xf32>,
    } else {
    }
    return
  }
  func.func @transform_0(%arg0: i32, %arg1: i32, %arg2: i32) -> (i32, i32) {
    %c0_i32 = arith.constant 0 : i32
    return %arg0, %arg2 : i32, i32
  }
  func.func @transform_1(%arg0: i32, %arg1: i32, %arg2: i32) -> (i32, i32) {
    %c0_i32 = arith.constant 0 : i32
    return %arg2, %arg1 : i32, i32
  }
  func.func @transform_2(%arg0: i32, %arg1: i32, %arg2: i32) -> (i32, i32) {
    %c0_i32 = arith.constant 0 : i32
    %c0_i32_0 = arith.constant 0 : i32
    return %c0_i32, %arg1 : i32, i32
  }
  func.func @transform_3(%arg0: i32, %arg1: i32, %arg2: i32) -> (i32, i32) {
    %c0_i32 = arith.constant 0 : i32
    return %arg0, %arg1 : i32, i32
  }
}

</mosaic_0001>

<bundles_post_ra>
// kernel: tpu_custom_call.1
= control target key start
LH: loop header
LB: loop body
LE: loop exit
PB: predicated region body
PF: predicated region fallthrough
CT: control target
= control target key end

     0   :  { %s1802_s0 = inlined_call_operand.hbm [shape: bf16[128,256], index: 0, kind: input, shape index: {}]   ;;  %s1803_s1 = inlined_call_operand.hbm [shape: bf16[256,256], index: 1, kind: input, shape index: {}]   ;;  %s1804_s2 = inlined_call_operand.hbm [shape: f32[1,256], index: 2, kind: input, shape index: {}]   ;;  %s1805_s3 = inlined_call_operand.hbm [shape: f32[128,256], index: 3, kind: output, shape index: {}]  }
   0x1   :  { %1827 = sst [smem:[#allocation27_spill]] %s1802_s0 }
   0x2   :  { %1828 = sst [smem:[#allocation28_spill]] %s1803_s1 }
   0x3   :  { %1829 = sst [smem:[#allocation29_spill]] %s1804_s2 }
   0x4   :  { %1830 = sst [smem:[#allocation30_spill]] %s1805_s3 }
   0x5   :  { %8 = vsyncpa [#allocation4], 0 }
   0x6   :  { %10 = vsyncpa [#allocation4 + $0x1], 0 }
   0x7   :  { %11 = vsyncpa [#allocation7], 0 }
   0x8   :  { %13 = vsyncpa [#allocation7 + $0x1], 0 }
   0x9   :  { %14 = vsyncpa [#allocation5], 0 }
   0xa   :  { %16 = vsyncpa [#allocation5 + $0x1], 0  ;;  %s1282_s12 = smov 0   ;;  %s1284_s13 = smov 0  }
   0xb   :  { %s1286_s14 = smov 0   ;;  %s1288_s15 = smov 0  }
   0xc   :  { %s1290_s16 = smov 0   ;;  %s1292_s17 = smov 0  }
   0xd   :  { %s1294_s18 = smov 0   ;;  %s1296_s19 = smov 0  }
   0xe   :  { %s1298_s20 = smov 0   ;;  %s1300_s21 = smov 0  }
   0xf   :  { %s1302_s22 = smov 0   ;;  %s1304_s23 = smov 0  }
  0x10   :  { %s1306_s24 = smov 0   ;;  %s1308_s25 = smov 0  }
  0x11   :  { %s1310_s26 = smov 0   ;;  %s1312_s27 = smov 0  }
  0x12   :  { %s1314_s28 = smov 0   ;;  %s1316_s29 = smov 0  }
  0x13   :  { %s1318_s30 = smov 0  }
  0x14 LB: > { %1831 = sst [smem:[#allocation14_spill]] %s1177_s12  ;;  %s34_s4 = sadd.s32 1, %s1237_s27  ;;  %s1249_s30 = sphi %s1318_s30, %s22_s30   ;;  %s1245_s29 = sphi %s1316_s29, %s1914_s29   ;;  %s1241_s28 = sphi %s1314_s28, %s1913_s28   ;;  %s1237_s27 = sphi %s1312_s27, %s1912_s27   ;;  %s1233_s26 = sphi %s1310_s26, %s1911_s26   ;;  %s1229_s25 = sphi %s1308_s25, %s1910_s25   ;;  %s1225_s24 = sphi %s1306_s24, %s1909_s24   ;;  %s1221_s23 = sphi %s1304_s23, %s1908_s23   ;;  %s1217_s22 = sphi %s1302_s22, %s1907_s22   ;;  %s1213_s21 = sphi %s1300_s21, %s1906_s21   ;;  %s1209_s20 = sphi %s1298_s20, %s1895_s20   ;;  %s1205_s19 = sphi %s1296_s19, %s1894_s19   ;;  %s1201_s18 = sphi %s1294_s18, %s1893_s18   ;;  %s1197_s17 = sphi %s1292_s17, %s1905_s17   ;;  %s1193_s16 = sphi %s1290_s16, %s1904_s16   ;;  %s1189_s15 = sphi %s1288_s15, %s1903_s15   ;;  %s1185_s14 = sphi %s1286_s14, %s1902_s14   ;;  %s1181_s13 = sphi %s1284_s13, %s1900_s13   ;;  %s1177_s12 = sphi %s1282_s12, %s1898_s12  }
  0x15   : > { %1832 = sst [smem:[#allocation15_spill]] %s1181_s13  ;;  %s37_s5 = sadd.s32 1, %s1241_s28 }
  0x16   : > { %1833 = sst [smem:[#allocation16_spill]] %s1189_s15  ;;  %p35_p0 = scmp.ge.s32.totalorder %s34_s4, 2 }
  0x17   : > { %1834 = sst [smem:[#allocation17_spill]] %s1201_s18  ;;  %p1815_p1 = scmp.eq.s32.totalorder %s1249_s30, 0 }
  0x18   : > { %1835 = sst [smem:[#allocation18_spill]] %s1205_s19  ;;  %s78_s6 = sadd.s32 1, %s1209_s20 }
  0x19   : > { %1836 = sst [smem:[#allocation19_spill]] %s1209_s20  ;;  %p85_p2 = scmp.ne.s32.totalorder %s1209_s20, %s1205_s19 }
  0x1a   : > { %1837 = sst [smem:[#allocation20_spill]] %s1225_s24  ;;  %s1916_s4 = smov (%p35_p0, %s34_s4), 0 }
  0x1b   : > { %1838 = sst [smem:[#allocation21_spill]] %s1229_s25  ;;  %s1918_s5 = smov (!%p35_p0, %s37_s5), %s1241_s28 }
  0x1c   : > { %1839 = sst [smem:[#allocation22_spill]] %s1233_s26  ;;  %s1390_s7 = ssub.s32 %s1237_s27, %s1916_s4 }
  0x1d   : > { %1840 = sst [smem:[#allocation23_spill]] %s1916_s4  ;;  %p1394_p3 = por %p85_p2, %p1815_p1 }
  0x1e   : > { %p1816_p4 = scmp.ge.s32.totalorder %s1918_s5, 2  ;;  %p1814_p6 = scmp.lt.s32.totalorder %s1249_s30, 8 }
  0x1f   : > { %s192_s4 = sand.u32 1, %s1249_s30   ;;  %s194_s3 = sand.u32 1, %s1209_s20  }
  0x20   : > { %s1405_s9 = scalar_select %p1816_p4, 0, %s1918_s5  }
  0x21   : > { %s716_s25 = sshll.u32 %s1237_s27, 5  ;;  %s685_s24 = sshll.u32 %s194_s3, 6 }
  0x22   : > { %1842 = sst [smem:[#allocation24_spill]] %s1405_s9  ;;  %s1409_s10 = ssub.s32 %s1241_s28, %s1405_s9 }
  0x23   : > { %s75_s11 = sor.u32 %s1409_s10, %s1390_s7  ;;  %s202_s2 = sadd.s32 %s1241_s28, %s716_s25 }
  0x24   : > { %p76_p7 = scmp.eq.s32.totalorder %s75_s11, 0  ;;  %s688_s12 = sshll.u32 %s202_s2, 6 }
  0x25   : > { %s1844_s1 = sld [smem:[#allocation28_spill]]  ;;  %s196_s9 = scalar_lea.vmem [#allocation6], %s685_s24 }
  0x26   : > { %s1417_s26 = scalar_select %p76_p7, %s1209_s20, %s78_s6  }
  0x27   : > { %s205_s19 = sshll.u32 %s196_s9, 4  ;;  %p1431_p8 = pnand %p1814_p6, %p1394_p3  ;;  %s1425_s19 = int_to_ptr.vmem [resolvable:$true] %s205_s19 }
  0x28   : > { %1843 = sst [smem:[#allocation25_spill]] %s1417_s26  ;;  %p230_p10 = scmp.lt.s32.totalorder %s1249_s30, 9 }
  0x29   : > { %s1437_s2 = scalar_lea.sflag [#allocation7], %s192_s4  ;;  %p967_p12 = pneg %p1431_p8 }
  0x2b   : > { %s1423_s18 = scalar_lea.hbm %s1844_s1, %s688_s12  ;;  %s970_s15 = scalar_lea.hbm %s1844_s1, 4096 }
  0x2c   : > { %s965_s3 = scalar_lea.hbm %s1423_s18, 1024  ;;  %p971_p2 = scmp.lt.u32.totalorder %s1423_s18, %s1844_s1 }
  0x2d   : > { %p966_p11 = scmp.ne.s32.totalorder %s1423_s18, %s965_s3  ;;  %p972_p3 = scmp.lt.u32.totalorder %s970_s15, %s965_s3 }
  0x2e   : > { %p974_p5 = scmp.lt.u32.totalorder %s965_s3, %s1423_s18 }
  0x2f   : > { %p968_p13 = pnand %p967_p12, %p966_p11  ;;  %p973_p7 = por %p972_p3, %p971_p2 }
  0x31   : > { %p969_p0 = pneg %p968_p13  ;;  %p975_p6 = por %p974_p5, %p973_p7 }
  0x33   : > { %p976_p1 = pnand %p975_p6, %p969_p0 }
  0x35   : > { %979 = shalt.err (!%p976_p1)
}
  0x36   : > { %s980_s4 = scalar_lea.vmem %s1425_s19, 1024  ;;  %s1251_s8 = smov [#allocation6]  }
  0x37   : > { %p981_p11 = scmp.ne.s32.totalorder %s1425_s19, %s980_s4  ;;  %s985_s9 = sshll.u32 %s1251_s8, 4  ;;  %s986_s9 = int_to_ptr.vmem [resolvable:$false] %s985_s9 }
  0x38   : > { %s987_s11 = scalar_lea.vmem %s986_s9, 2048  ;;  %p988_p9 = scmp.lt.s32.totalorder %s1425_s19, %s986_s9 }
  0x39   : > { %p983_p13 = pnand %p981_p11, %p967_p12  ;;  %p989_p2 = scmp.lt.s32.totalorder %s987_s11, %s980_s4 }
  0x3b   : > { %p984_p4 = pneg %p983_p13  ;;  %p990_p3 = por %p989_p2, %p988_p9 }
  0x3d   : > { %p991_p5 = pnand %p990_p3, %p984_p4 }
  0x3f   : > { %994 = shalt.err (!%p991_p5)
}
  0x40   : > { %s1817_s3 = smov 128   ;;  %s1818_s12 = smov 64  }
  0x41   : > { %s1819_s13 = smov 4   ;;  %p1846_p1 = scmp.ge.s32.totalorder %s1249_s30, 1 }
  0x42   : > { %784 = dma.hbm_to_vmem [thread:$0]  (!%p1431_p8), %s1423_s18, 1024, %s1425_s19, %s1437_s2, %s1817_s3, %s1818_s12, %s1819_s13  }
  0x43   : > { %p1472_p4 = pnand %p1846_p1, %p230_p10  ;;  %s41_s24 = sadd.s32 1, %s1245_s29 }
  0x44   : > { %s50_s25 = sadd.s32 1, %s1221_s23  ;;  %p1849_p6 = scmp.ge.s32.totalorder %s1918_s5, 2 }
  0x45   : > { %s1847_s15 = scalar_select %p1472_p4, 1, 0 }
  0x46   : > { %s1920_s24 = smov (!%p1849_p6, %s41_s24), %s1245_s29  ;;  %p57_p9 = scmp.ne.s32.totalorder %s1221_s23, %s1217_s22 }
  0x47   : > { %1848 = sst [smem:[#allocation26_spill]] %s1847_s15  ;;  %p43_p0 = scmp.ge.s32.totalorder %s1920_s24, 2 }
  0x48   : > { %s132_s6 = sadd.s32 1, %s1185_s14  ;;  %p1850_p7 = scmp.eq.s32.totalorder %s1249_s30, 0 }
  0x49   : > { %s169_s19 = sand.u32 1, %s1221_s23   ;;  %s1922_s24 = smov (%p43_p0, %s1920_s24), 0 }
  0x4a   : > { %p1488_p8 = por %p1850_p7, %p57_p9  ;;  %s681_s5 = sshll.u32 %s169_s19, 5 }
  0x4b   : > { %s45_s4 = ssub.s32 %s1245_s29, %s1922_s24  ;;  %s715_s11 = sshll.u32 %s1245_s29, 4 }
  0x4c   : > { %s47_s8 = sor.u32 %s1390_s7, %s45_s4  ;;  %s129_s9 = sor.u32 %s1409_s10, %s45_s4 }
  0x4d   : > { %p48_p10 = scmp.eq.s32.totalorder %s47_s8, 0  ;;  %p130_p11 = scmp.eq.s32.totalorder %s129_s9, 0 }
  0x4e   : > { %s173_s3 = scalar_lea.vmem [#allocation3], %s681_s5  ;;  %s179_s26 = sadd.s32 %s1237_s27, %s715_s11 }
  0x4f   : > { %s182_s12 = sshll.u32 %s173_s3, 4  ;;  %s684_s20 = sshll.u32 %s179_s26, 6  ;;  %s1507_s12 = int_to_ptr.vmem [resolvable:$true] %s182_s12 }
  0x50   : > { %s1501_s13 = scalar_select %p48_p10, %s1221_s23, %s50_s25  }
  0x51   : > { %s1504_s1 = scalar_select %p130_p11, %s1185_s14, %s132_s6  }
  0x52   : > { %p1852_p13 = scmp.lt.s32.totalorder %s1249_s30, 8  ;;  %s1854_s0 = sld [smem:[#allocation27_spill]] }
  0x53   : > { %s1522_s25 = scalar_lea.sflag [#allocation4], %s169_s19 }
  0x54   : > { %p1513_p2 = pnand %p1852_p13, %p1488_p8 }
  0x56   : > { %p997_p5 = pneg %p1513_p2 }
  0x58   : > { %s1520_s3 = scalar_lea.hbm %s1854_s0, %s684_s20  ;;  %s1000_s5 = scalar_lea.hbm %s1854_s0, 2048 }
  0x59   : > { %s995_s26 = scalar_lea.hbm %s1520_s3, 512  ;;  %p1001_p9 = scmp.lt.u32.totalorder %s1520_s3, %s1854_s0 }
  0x5a   : > { %p996_p3 = scmp.ne.s32.totalorder %s1520_s3, %s995_s26  ;;  %p1002_p0 = scmp.lt.u32.totalorder %s1000_s5, %s995_s26 }
  0x5b   : > { %p1004_p8 = scmp.lt.u32.totalorder %s995_s26, %s1520_s3 }
  0x5c   : > { %p998_p1 = pnand %p997_p5, %p996_p3  ;;  %p1003_p7 = por %p1002_p0, %p1001_p9 }
  0x5e   : > { %p999_p6 = pneg %p998_p1  ;;  %p1005_p10 = por %p1004_p8, %p1003_p7 }
  0x60   : > { %p1006_p11 = pnand %p1005_p10, %p999_p6 }
  0x62   : > { %1009 = shalt.err (!%p1006_p11)
}
  0x63   : > { %s1010_s19 = scalar_lea.vmem %s1507_s12, 512  ;;  %s1255_s9 = smov [#allocation3]  }
  0x64   : > { %p1011_p13 = scmp.ne.s32.totalorder %s1507_s12, %s1010_s19  ;;  %s1015_s11 = sshll.u32 %s1255_s9, 4  ;;  %s1016_s11 = int_to_ptr.vmem [resolvable:$false] %s1015_s11 }
  0x65   : > { %s1017_s7 = scalar_lea.vmem %s1016_s11, 1024  ;;  %p1018_p12 = scmp.lt.s32.totalorder %s1507_s12, %s1016_s11 }
  0x66   : > { %p1013_p3 = pnand %p1011_p13, %p997_p5  ;;  %p1019_p9 = scmp.lt.s32.totalorder %s1017_s7, %s1010_s19 }
  0x68   : > { %p1014_p1 = pneg %p1013_p3  ;;  %p1020_p0 = por %p1019_p9, %p1018_p12 }
  0x6a   : > { %p1021_p7 = pnand %p1020_p0, %p1014_p1 }
  0x6c   : > { %1024 = shalt.err (!%p1021_p7)
}
  0x6d   : > { %s1855_s4 = smov 4   ;;  %s1856_s26 = smov 64  }
  0x6e   : > { %s1857_s6 = smov 128   ;;  %s1858_s18 = sld [smem:[#allocation18_spill]] }
  0x6f   : > { %s1859_s5 = sld [smem:[#allocation17_spill]]  ;;  %s1860_s20 = sld [smem:[#allocation16_spill]] }
  0x70   : > { %s1861_s15 = sld [smem:[#allocation15_spill]]  ;;  %s1862_s8 = sld [smem:[#allocation14_spill]] }
  0x71   : > { %781 = dma.hbm_to_vmem [thread:$0]  (!%p1513_p2), %s1520_s3, 512, %s1507_s12, %s1522_s25, %s1857_s6, %s1856_s26, %s1855_s4  }
  0x72   : > { %s1554_s19 = sadd.s32 4294967295, %s1249_s30   ;;  %s678_s9 = sadd.s32 4294967294, %s1249_s30  }
  0x73   : > { %p64_p12 = scmp.eq.s32.totalorder %s1554_s19, 0  ;;  %p102_p5 = scmp.eq.s32.totalorder %s1409_s10, 0 }
  0x74   : > { %s104_s11 = sadd.s32 1, %s1197_s17  ;;  %p111_p6 = scmp.ne.s32.totalorder %s1197_s17, %s1193_s16 }
  0x75   : > { %p1863_p8 = scmp.ne.s32.totalorder %s1217_s22, %s1213_s21  ;;  %p1865_p11 = scmp.ne.s32.totalorder %s1858_s18, %s1859_s5 }
  0x76   : > { %s1577_s12 = scalar_select %p102_p5, %s1197_s17, %s104_s11  }
  0x77   : > { %p1565_p10 = por %p64_p12, %p1863_p8  ;;  %p1572_p13 = por %p1865_p11, %p64_p12 }
  0x78   : > { %p1867_p2 = scmp.eq.s32.totalorder %s1249_s30, 0  ;;  %p117_p1 = scmp.ne.s32.totalorder %s1193_s16, %s1860_s20 }
  0x79   : > { %s1864_s7 = scalar_select %p1565_p10, 1, 0 }
  0x7a   : > { %s1866_s0 = scalar_select %p1572_p13, 1, 0 }
  0x7b   : > { %p1581_p3 = por %p111_p6, %p1867_p2  ;;  %p142_p9 = scmp.ne.s32.totalorder %s1185_s14, %s1861_s15 }
  0x7c   : > { %p143_p0 = scmp.eq.s32.totalorder %s1554_s19, 7  ;;  %p1590_p7 = por %p117_p1, %p64_p12 }
  0x7d   : > { %p148_p8 = scmp.ne.s32.totalorder %s1861_s15, %s1862_s8  ;;  %p149_p5 = scmp.eq.s32.totalorder %s678_s9, 7 }
  0x7e   : > { %s1869_s21 = scalar_select %p1590_p7, 1, 0 }
  0x7f   : > { %p1596_p11 = por %p143_p0, %p142_p9  ;;  %s217_s25 = sand.u32 1, %s1197_s17  }
  0x80   : > { %s689_s4 = sshll.u32 %s1241_s28, 4  ;;  %p1602_p6 = por %p149_p5, %p148_p8 }
  0x81   : > { %s1870_s10 = scalar_select %p1596_p11, 1, 0 }
  0x82   : > { %s1871_s26 = scalar_select %p1602_p6, 1, 0 }
  0x83   : > { %s1872_s5 = sld [smem:[#allocation29_spill]]  ;;  %s218_s15 = scalar_lea.vmem [#allocation8], %s217_s25 }
  0x84   : > { %s225_s8 = sshll.u32 %s218_s15, 4  ;;  %p1873_p12 = scmp.lt.s32.totalorder %s1249_s30, 8  ;;  %s1611_s8 = int_to_ptr.vmem [resolvable:$true] %s225_s8 }
  0x86   : > { %p1617_p2 = pnand %p1873_p12, %p1581_p3 }
  0x88   : > { %p1027_p9 = pneg %p1617_p2 }
  0x89   : > { %s1609_s20 = scalar_lea.hbm %s1872_s5, %s689_s4  ;;  %s1030_s6 = scalar_lea.hbm %s1872_s5, 32 }
  0x8a   : > { %s1025_s11 = scalar_lea.hbm %s1609_s20, 16  ;;  %p1031_p3 = scmp.lt.u32.totalorder %s1609_s20, %s1872_s5 }
  0x8b   : > { %p1026_p1 = scmp.ne.s32.totalorder %s1609_s20, %s1025_s11  ;;  %p1032_p5 = scmp.lt.u32.totalorder %s1030_s6, %s1025_s11 }
  0x8c   : > { %p1034_p6 = scmp.lt.u32.totalorder %s1025_s11, %s1609_s20 }
  0x8d   : > { %p1028_p0 = pnand %p1027_p9, %p1026_p1  ;;  %p1033_p12 = por %p1032_p5, %p1031_p3 }
  0x8f   : > { %p1029_p8 = pneg %p1028_p0  ;;  %p1035_p11 = por %p1034_p6, %p1033_p12 }
  0x91   : > { %p1036_p7 = pnand %p1035_p11, %p1029_p8 }
  0x93   : > { %1039 = shalt.err (!%p1036_p7)
}
  0x94   : > { %s1040_s15 = scalar_lea.vmem %s1611_s8, 16  ;;  %s1256_s25 = smov [#allocation8]  }
  0x95   : > { %p1041_p1 = scmp.ne.s32.totalorder %s1611_s8, %s1040_s15  ;;  %s1045_s4 = sshll.u32 %s1256_s25, 4  ;;  %s1046_s4 = int_to_ptr.vmem [resolvable:$false] %s1045_s4 }
  0x96   : > { %s1047_s3 = scalar_lea.vmem %s1046_s4, 32  ;;  %p1048_p10 = scmp.lt.s32.totalorder %s1611_s8, %s1046_s4 }
  0x97   : > { %p1043_p0 = pnand %p1041_p1, %p1027_p9  ;;  %p1049_p3 = scmp.lt.s32.totalorder %s1047_s3, %s1040_s15 }
  0x99   : > { %p1044_p13 = pneg %p1043_p0  ;;  %p1050_p5 = por %p1049_p3, %p1048_p10 }
  0x9b   : > { %p1051_p6 = pnand %p1050_p5, %p1044_p13 }
  0x9d   : > { %1054 = shalt.err (!%p1051_p6)
}
  0x9e   : > { %787 = dma.hbm_to_vmem [thread:$0]  (!%p1617_p2), %s1609_s20, 16, %s1611_s8, %s1437_s2  }
  0x9f   : > { %234 = sbr.rel (%p1472_p4) target bundleno = 487 (0x1e7), region = 32  ;;  %s236_s6 = sand.u32 (!%p1472_p4), 1, %s1217_s22  }
  0xa0   : > { %s691_s18 = sshll.u32 (!%p1472_p4), %s236_s6, 5  ;;  %s237_s25 = scalar_lea.sflag (!%p1472_p4), [#allocation4], %s236_s6 }
  0xa1   : > { %s1650_s5 = scalar_lea.vmem (!%p1472_p4), [#allocation3], %s691_s18  ;;  %p1876_p7 = scmp.ne.s32.totalorder (!%p1472_p4), %s1864_s7, 0 }
  0xa6   : > { %1160 = dma.done.wait (%p1876_p7), %s237_s25, 512  }
  0xa7   : > { %1162 = vsyncadd (%p1876_p7), %s237_s25, 4294966784  ;;  %s1877_s9 = sld [smem:[#allocation18_spill]]  ;;  %s245_s15 = sand.u32 1, %s1554_s19  }
  0xa8   : > { %s246_s8 = scalar_lea.sflag [#allocation7], %s245_s15  ;;  %p1878_p4 = scmp.ne.s32.totalorder %s1866_s0, 0 }
  0xad   : > { %s247_s2 = sand.u32 1, %s1877_s9  }
  0xae   : > { %s692_s20 = sshll.u32 %s247_s2, 6 }
  0xaf   : > { %s1658_s4 = scalar_lea.vmem [#allocation6], %s692_s20 }
  0xb0   : > { %1164 = dma.done.wait (%p1878_p4), %s246_s8, 1024  }
  0xb1   : > { %1166 = vsyncadd (%p1878_p4), %s246_s8, 4294966272  ;;  %s256_s3 = sand.u32 1, %s1193_s16   ;;  %p1879_p10 = scmp.ne.s32.totalorder %s1869_s21, 0 }
  0xb2   : > { %s1665_s11 = scalar_lea.vmem [#allocation8], %s256_s3 }
  0xb3   : > { %1168 = dma.done.wait (%p1879_p10), %s246_s8, 16  }
  0xb4   : > { %1170 = vsyncadd (%p1879_p10), %s246_s8, 4294967280  ;;  %s1880_s19 = sld [smem:[#allocation15_spill]]  ;;  %s1881_s25 = sld [smem:[#allocation20_spill]] }
  0xba   : > { %s286_s7 = sand.u32 1, %s1880_s19   ;;  %p694_p13 = scmp.ne.s32.totalorder %s1881_s25, 0 }
  0xbb   : > { %s693_s6 = sshll.u32 %s286_s7, 6  ;;  %v1257_v0 = vmov (!%p694_p13), 0.0  }
  0xbc   : > { %s1674_s18 = scalar_lea.vmem [#allocation9], %s693_s6  ;;  %296 = sbr.rel (%p694_p13) target bundleno = 195 (0xc3), region = 48  ;;  %297 = vst [vmem:[#allocation2] sm:$0xff] (!%p694_p13), %v1257_v0  ;;  %298 = vst [vmem:[#allocation2 + $0x8] sm:$0xff] (!%p694_p13), %v1257_v0 }
  0xbd   : > { %299 = vst [vmem:[#allocation2 + $0x10] sm:$0xff] (!%p694_p13), %v1257_v0  ;;  %300 = vst [vmem:[#allocation2 + $0x18] sm:$0xff] (!%p694_p13), %v1257_v0 }
  0xbe   : > { %301 = vst [vmem:[#allocation2 + $0x20] sm:$0xff] (!%p694_p13), %v1257_v0  ;;  %302 = vst [vmem:[#allocation2 + $0x28] sm:$0xff] (!%p694_p13), %v1257_v0 }
  0xbf   : > { %303 = vst [vmem:[#allocation2 + $0x30] sm:$0xff] (!%p694_p13), %v1257_v0  ;;  %304 = vst [vmem:[#allocation2 + $0x38] sm:$0xff] (!%p694_p13), %v1257_v0 }
  0xc3 PF: > { %v953_v1 = vld [vmem:[%s1658_s4] sm:$0xff]   ;;  %v954_v2 = vld [vmem:[%s1658_s4 + $0x8] sm:$0xff]   ;;  %v955_v3 = vld [vmem:[%s1658_s4 + $0x10] sm:$0xff]   ;;  %s1882_s0 = sld [smem:[#allocation20_spill]] }
  0xc4   : > { %730 = vmatprep.subr.bf16.mxu0 %v953_v1  ;;  %754 = vmatprep.subr.bf16.mxu1 %v953_v1  ;;  %v956_v4 = vld [vmem:[%s1658_s4 + $0x18] sm:$0xff]   ;;  %v961_v5 = vld [vmem:[%s1650_s5] sm:$0xff]   ;;  %v962_v6 = vld [vmem:[%s1650_s5 + $0x10] sm:$0xff]  }
  0xc5   : > { %731 = vmatpush3.bf16.msra.mxu0 %v953_v1  ;;  %762 = vmatpush3.bf16.msra.mxu1 %v953_v1  ;;  %v957_v7 = vld [vmem:[%s1658_s4 + $0x20] sm:$0xff]   ;;  %v958_v8 = vld [vmem:[%s1658_s4 + $0x28] sm:$0xff]   ;;  %v959_v9 = vld [vmem:[%s1658_s4 + $0x30] sm:$0xff]  }
  0xc6   : > { %732 = vmatprep.subr.bf16.mxu0 %v954_v2  ;;  %755 = vmatprep.subr.bf16.mxu1 %v954_v2  ;;  %v960_v10 = vld [vmem:[%s1658_s4 + $0x38] sm:$0xff]   ;;  %v963_v11 = vld [vmem:[%s1650_s5 + $0x8] sm:$0xff]   ;;  %v307_v13 = vld [vmem:[#allocation2 + $0x10] sm:$0xff] }
  0xc7   : > { %746 = vmatprep.mubr.bf16.mxu0 %v961_v5  ;;  %750 = vmatprep.mubr.bf16.mxu1 %v962_v6  ;;  %v964_v12 = vld [vmem:[%s1650_s5 + $0x18] sm:$0xff]   ;;  %v311_v14 = vld [vmem:[#allocation2 + $0x30] sm:$0xff]  ;;  %v305_v15 = vld [vmem:[#allocation2] sm:$0xff] }
  0xc8   : > { %v309_v16 = vld [vmem:[#allocation2 + $0x20] sm:$0xff]  ;;  %v308_v19 = vld [vmem:[#allocation2 + $0x18] sm:$0xff]  ;;  %v306_v25 = vld [vmem:[#allocation2 + $0x8] sm:$0xff] }
  0xc9   : > { %733 = vmatpush3.bf16.msra.mxu0 %v954_v2  ;;  %763 = vmatpush3.bf16.msra.mxu1 %v954_v2  ;;  %v312_v20 = vld [vmem:[#allocation2 + $0x38] sm:$0xff]  ;;  %v310_v26 = vld [vmem:[#allocation2 + $0x28] sm:$0xff]  ;;  %p707_p11 = scmp.ne.s32.totalorder %s1882_s0, 1 }
  0xca   : > { %734 = vmatprep.subr.bf16.mxu0 %v955_v3  ;;  %756 = vmatprep.subr.bf16.mxu1 %v955_v3  ;;  %v708_v38 = vld [vmem:[%s1665_s11] ss:$0 sm:$0xff] (!%p707_p11) }
  0xcd   : > { %735 = vmatpush3.bf16.msra.mxu0 %v955_v3  ;;  %764 = vmatpush3.bf16.msra.mxu1 %v955_v3 }
  0xce   : > { %736 = vmatprep.subr.bf16.mxu0 %v956_v4  ;;  %757 = vmatprep.subr.bf16.mxu1 %v956_v4 }
  0xd1   : > { %737 = vmatpush3.bf16.msra.mxu0 %v956_v4  ;;  %765 = vmatpush3.bf16.msra.mxu1 %v956_v4 }
  0xd2   : > { %738 = vmatprep.subr.bf16.mxu0 %v957_v7  ;;  %758 = vmatprep.subr.bf16.mxu1 %v957_v7 }
  0xd5   : > { %739 = vmatpush3.bf16.msra.mxu0 %v957_v7  ;;  %766 = vmatpush3.bf16.msra.mxu1 %v957_v7 }
  0xd6   : > { %740 = vmatprep.subr.bf16.mxu0 %v958_v8  ;;  %759 = vmatprep.subr.bf16.mxu1 %v958_v8 }
  0xd9   : > { %741 = vmatpush3.bf16.msra.mxu0 %v958_v8  ;;  %767 = vmatpush3.bf16.msra.mxu1 %v958_v8 }
  0xda   : > { %742 = vmatprep.subr.bf16.mxu0 %v959_v9  ;;  %760 = vmatprep.subr.bf16.mxu1 %v959_v9 }
  0xdd   : > { %743 = vmatpush3.bf16.msra.mxu0 %v959_v9  ;;  %768 = vmatpush3.bf16.msra.mxu1 %v959_v9 }
  0xde   : > { %744 = vmatprep.subr.bf16.mxu0 %v960_v10  ;;  %761 = vmatprep.subr.bf16.mxu1 %v960_v10 }
  0xe1   : > { %745 = vmatpush3.bf16.msra.mxu0 %v960_v10  ;;  %769 = vmatpush3.bf16.msra.mxu1 %v960_v10 }
  0xe4   : > { %747 = vmatmul.mubr.bf16.vlgmr.msra.gmra.mrb[0].mxu0 %v963_v11  ;;  %751 = vmatmul.mubr.bf16.vlgmr.msra.gmra.mrb[0].mxu1 %v964_v12 }
 0x1b7   : > { %v748_v17 = vpop.f32.mrb[0].mxu0  ;;  %v752_v18 = vpop.f32.mrb[0].mxu1  ;;  %493 = sbr.rel (%p707_p11) target bundleno = 457 (0x1c9), region = 52 }
 0x1b8   : > { %v476_v21 = vadd.f32 %v748_v17, %v307_v13  ;;  %v480_v22 = vadd.f32 %v752_v18, %v311_v14  ;;  %v443_v23 = vpop.f32.mrb[1].mxu0  ;;  %v459_v24 = vpop.f32.mrb[1].mxu1 }
 0x1b9   : > { %v474_v27 = vadd.f32 %v443_v23, %v305_v15  ;;  %v478_v28 = vadd.f32 %v459_v24, %v309_v16  ;;  %v749_v29 = vpop.f32.mrb[2].mxu0  ;;  %v753_v30 = vpop.f32.mrb[2].mxu1 }
 0x1ba   : > { %484 = vst [vmem:[#allocation2 + $0x10] sm:$0xff] %v476_v21  ;;  %488 = vst [vmem:[#allocation2 + $0x30] sm:$0xff] %v480_v22  ;;  %v477_v31 = vadd.f32 %v749_v29, %v308_v19  ;;  %v481_v32 = vadd.f32 %v753_v30, %v312_v20  ;;  %v446_v33 = vpop.f32.mrb[3].mxu0  ;;  %v462_v34 = vpop.f32.mrb[3].mxu1 }
 0x1bb   : > { %482 = vst [vmem:[#allocation2] sm:$0xff] %v474_v27  ;;  %486 = vst [vmem:[#allocation2 + $0x20] sm:$0xff] %v478_v28  ;;  %v475_v35 = vadd.f32 %v446_v33, %v306_v25  ;;  %v479_v36 = vadd.f32 %v462_v34, %v310_v26 }
 0x1bc   : > { %485 = vst [vmem:[#allocation2 + $0x18] sm:$0xff] %v477_v31  ;;  %489 = vst [vmem:[#allocation2 + $0x38] sm:$0xff] %v481_v32 }
 0x1bd   : > { %483 = vst [vmem:[#allocation2 + $0x8] sm:$0xff] %v475_v35  ;;  %487 = vst [vmem:[#allocation2 + $0x28] sm:$0xff] %v479_v36 }
 0x1c1   : > { %v496_v42 = vld [vmem:[#allocation2 + $0x10] sm:$0xff] }
 0x1c2   : > { %v494_v37 = vld [vmem:[#allocation2] sm:$0xff]  ;;  %v511_v45 = vadd.f32 %v708_v38, %v496_v42  ;;  %v500_v49 = vld [vmem:[#allocation2 + $0x30] sm:$0xff] }
 0x1c3   : > { %v509_v40 = vadd.f32 %v708_v38, %v494_v37  ;;  %v497_v43 = vld [vmem:[#allocation2 + $0x18] sm:$0xff]  ;;  %v498_v44 = vld [vmem:[#allocation2 + $0x20] sm:$0xff]  ;;  %v515_v52 = vadd.f32 %v708_v38, %v500_v49 }
 0x1c4   : > { %v495_v39 = vld [vmem:[#allocation2 + $0x8] sm:$0xff]  ;;  %v512_v46 = vadd.f32 %v708_v38, %v497_v43  ;;  %v513_v47 = vadd.f32 %v708_v38, %v498_v44  ;;  %v501_v50 = vld [vmem:[#allocation2 + $0x38] sm:$0xff]  ;;  %519 = vst [vmem:[%s1674_s18 + $0x10] sm:$0xff] %v511_v45 }
 0x1c5   : > { %v510_v41 = vadd.f32 %v708_v38, %v495_v39  ;;  %v499_v48 = vld [vmem:[#allocation2 + $0x28] sm:$0xff]  ;;  %517 = vst [vmem:[%s1674_s18] sm:$0xff] %v509_v40  ;;  %v516_v53 = vadd.f32 %v708_v38, %v501_v50  ;;  %523 = vst [vmem:[%s1674_s18 + $0x30] sm:$0xff] %v515_v52 }
 0x1c6   : > { %v514_v51 = vadd.f32 %v708_v38, %v499_v48  ;;  %520 = vst [vmem:[%s1674_s18 + $0x18] sm:$0xff] %v512_v46  ;;  %521 = vst [vmem:[%s1674_s18 + $0x20] sm:$0xff] %v513_v47 }
 0x1c7   : > { %518 = vst [vmem:[%s1674_s18 + $0x8] sm:$0xff] %v510_v41  ;;  %524 = vst [vmem:[%s1674_s18 + $0x38] sm:$0xff] %v516_v53 }
 0x1c8   : > { %522 = vst [vmem:[%s1674_s18 + $0x28] sm:$0xff] %v514_v51 }
 0x1c9 PF: > { %s1883_s21 = sld [smem:[#allocation22_spill]]  ;;  %s1884_s5 = sld [smem:[#allocation21_spill]] }
 0x1ca   : > { %s541_s20 = sshll.u32 %s1674_s18, 4  ;;  %s1886_s11 = sld [smem:[#allocation30_spill]]  ;;  %s1702_s20 = int_to_ptr.vmem [resolvable:$true] %s541_s20 }
 0x1cb   : > { %s1711_s6 = scalar_lea.sflag [#allocation5], %s286_s7  ;;  %s1055_s25 = scalar_lea.vmem %s1702_s20, 1024 }
 0x1cc   : > { %p1056_p2 = scmp.ne.s32.totalorder %s1702_s20, %s1055_s25  ;;  %p1887_p9 = scmp.ne.s32.totalorder %s1870_s10, 0 }
 0x1cd   : > { %s1258_s18 = smov [#allocation9]  }
 0x1ce   : > { %p1057_p8 = pnand %p1056_p2, %p1887_p9  ;;  %s1059_s0 = sshll.u32 %s1258_s18, 4  ;;  %s1060_s0 = int_to_ptr.vmem [resolvable:$false] %s1059_s0 }
 0x1cf   : > { %s717_s15 = sshll.u32 %s1883_s21, 4  ;;  %s1061_s21 = scalar_lea.vmem %s1060_s0, 2048 }
 0x1d0   : > { %s538_s2 = sadd.s32 %s1884_s5, %s717_s15  ;;  %p1058_p12 = pneg %p1057_p8 }
 0x1d1   : > { %s712_s8 = sshll.u32 %s538_s2, 7  ;;  %p1062_p1 = scmp.lt.s32.totalorder %s1702_s20, %s1060_s0 }
 0x1d2   : > { %s1707_s19 = scalar_lea.hbm %s1886_s11, %s712_s8  ;;  %p1063_p0 = scmp.lt.s32.totalorder %s1061_s21, %s1055_s25 }
 0x1d4   : > { %p1064_p3 = por %p1063_p0, %p1062_p1 }
 0x1d6   : > { %p1065_p5 = pnand %p1064_p3, %p1058_p12 }
 0x1d8   : > { %1068 = shalt.err (!%p1065_p5)
}
 0x1d9   : > { %s1069_s7 = scalar_lea.hbm %s1707_s19, 1024  ;;  %s1073_s15 = scalar_lea.hbm %s1886_s11, 4096 }
 0x1da   : > { %p1070_p6 = scmp.ne.s32.totalorder %s1707_s19, %s1069_s7  ;;  %p1074_p10 = scmp.lt.u32.totalorder %s1707_s19, %s1886_s11 }
 0x1db   : > { %p1075_p13 = scmp.lt.u32.totalorder %s1073_s15, %s1069_s7  ;;  %p1077_p2 = scmp.lt.u32.totalorder %s1069_s7, %s1707_s19 }
 0x1dc   : > { %p1071_p7 = pnand %p1070_p6, %p1887_p9 }
 0x1dd   : > { %p1076_p11 = por %p1075_p13, %p1074_p10 }
 0x1de   : > { %p1072_p4 = pneg %p1071_p7 }
 0x1df   : > { %p1078_p8 = por %p1077_p2, %p1076_p11 }
 0x1e1   : > { %p1079_p12 = pnand %p1078_p8, %p1072_p4 }
 0x1e3   : > { %1082 = shalt.err (!%p1079_p12)
}
 0x1e4   : > { %s1259_s4 = smov 128   ;;  %s1260_s3 = smov 256  }
 0x1e5   : > { %s1261_s25 = smov 8  }
 0x1e6   : > { %776 = dma.vmem_to_hbm [thread:$0]  (%p1887_p9), %s1702_s20, 1024, %s1707_s19, %s1711_s6, %s1259_s4, %s1260_s3, %s1261_s25  }
 0x1e7 PF: > { %s1888_s18 = sld [smem:[#allocation14_spill]]  ;;  %p793_p1 = scmp.ge.s32.totalorder %s1249_s30, 2 }
 0x1e8   : > { %p1889_p0 = scmp.ne.s32.totalorder %s1871_s26, 0 }
 0x1ea   : > { %p789_p3 = pnand %p793_p1, %p1889_p0 }
 0x1ed   : > { %s556_s0 = sand.u32 1, %s1888_s18  }
 0x1ee   : > { %s557_s21 = scalar_lea.sflag [#allocation5], %s556_s0 }
 0x1ef   : > { %1172 = dma.done.wait (!%p789_p3), %s557_s21, 1024  }
 0x1f0   : > { %1174 = vsyncadd (!%p789_p3), %s557_s21, 4294966272  ;;  %s22_s30 = sadd.s32 1, %s1249_s30   ;;  %s1891_s5 = sld [smem:[#allocation15_spill]] }
 0x1f1   : > { %p1740_p5 = scmp.ge.s32.totalorder %s22_s30, 10   ;;  %s1892_s10 = smov %s1577_s12 }
 0x1f2   : > { %s1893_s18 = sld [smem:[#allocation18_spill]]  ;;  %s1894_s19 = sld [smem:[#allocation19_spill]] }
 0x1f3   : > { %s1895_s20 = sld [smem:[#allocation25_spill]]  ;;  %s1896_s26 = smov %s1501_s13 }
 0x1f4   : > { %s1897_s6 = sld [smem:[#allocation23_spill]]  ;;  %s1899_s9 = sld [smem:[#allocation24_spill]] }
 0x1f5   : > { %s1900_s13 = smov %s1185_s14  ;;  %s1901_s2 = smov %s1922_s24 }
 0x1f6   : > { %s1898_s12 = smov %s1891_s5  ;;  %s1902_s14 = smov %s1504_s1 }
 0x1f7   : > { %s1903_s15 = smov %s1193_s16  ;;  %s1904_s16 = smov %s1197_s17 }
 0x1f8   : > { %s1905_s17 = smov %s1892_s10  ;;  %s1906_s21 = smov %s1217_s22 }
 0x1f9   : > { %s1907_s22 = smov %s1221_s23  ;;  %s1908_s23 = smov %s1896_s26 }
 0x1fa   : > { %s1909_s24 = smov %s1237_s27  ;;  %s1910_s25 = smov %s1241_s28 }
 0x1fb   : > { %s1911_s26 = smov %s1245_s29  ;;  %s1912_s27 = smov %s1897_s6 }
 0x1fc   : > { %s1913_s28 = smov %s1899_s9  ;;  %s1914_s29 = smov %s1901_s2 }
 0x1fd   :  { %21 = sbr.rel (!%p1740_p5) target bundleno = 20 (0x14), region = 109 }
 0x204   :  { %562 = vsyncpa [#allocation4], 1 }
 0x205   :  { %564 = vsyncpa [#allocation4 + $0x1], 1 }
 0x206   :  { %565 = vsyncpa [#allocation7], 1 }
 0x207   :  { %567 = vsyncpa [#allocation7 + $0x1], 1 }
 0x208   :  { %568 = vsyncpa [#allocation5], 1 }
 0x209   :  { %570 = vsyncpa [#allocation5 + $0x1], 1 }

</bundles_post_ra>
